<compile_context>
chip_gen: v7x
topology: tpu7x:2x2x1
jax: 0.10.0
libtpu: 0.0.40
codegen_flags: <defaults>
</compile_context>

<pallas_src>
import jax
import jax.numpy as jnp
from jax.experimental import pallas as pl
from jax.experimental.pallas import tpu as pltpu


HIDDEN = 256


def _round_up(x, m):
    return (x + m - 1) // m * m


def critic_kernel(s_ref, a_ref, w1s_ref, w1a_ref, b1_ref, w2_ref, b2_ref,
                  w3_ref, b3_ref, o_ref):
    # Layer 1 (fused concat): state @ W1[:S] + action @ W1[S:]  -- bf16 MXU, f32 acc.
    h1 = jnp.dot(s_ref[...], w1s_ref[...], preferred_element_type=jnp.float32)
    h1 = h1 + jnp.dot(a_ref[...], w1a_ref[...], preferred_element_type=jnp.float32)
    h1 = jnp.maximum(h1 + b1_ref[...], 0.0)                       # f32 VPU

    # Layer 2: bf16 MXU, f32 accumulation.
    h2 = jnp.dot(h1.astype(jnp.bfloat16), w2_ref[...],
                 preferred_element_type=jnp.float32)
    h2 = jnp.maximum(h2 + b2_ref[...], 0.0)                       # f32 VPU

    # Layer 3 (256 -> 1): VPU broadcast-multiply + lane reduction; keeps MXU free.
    q = jnp.sum(h2 * w3_ref[...], axis=-1, keepdims=True) + b3_ref[...]
    o_ref[...] = q.astype(o_ref.dtype)


def critic_forward(state, action, params):
    """state: (B, S) f32, action: (B, A) f32. Returns q1: (B, 1) f32."""
    w1_s, w1_a, b1, w2, b2, w3, b3 = params
    B, S = state.shape
    A = action.shape[1]

    # Batch tile: lane/sublane friendly, bounded VMEM, good DMA amortization.
    TB = 512 if B >= 512 else max(_round_up(B, 128), 128)
    Bp = _round_up(B, TB)

    s = state.astype(jnp.bfloat16)
    a = action.astype(jnp.bfloat16)
    if Bp != B:
        s = jnp.pad(s, ((0, Bp - B), (0, 0)))
        a = jnp.pad(a, ((0, Bp - B), (0, 0)))

    grid = (Bp // TB,)

    const = lambda shape: pl.BlockSpec(shape, lambda i: (0,) * len(shape))

    out = pl.pallas_call(
        critic_kernel,
        out_shape=jax.ShapeDtypeStruct((Bp, 1), jnp.float32),
        grid=grid,
        in_specs=[
            pl.BlockSpec((TB, S), lambda i: (i, 0)),   # state tile
            pl.BlockSpec((TB, A), lambda i: (i, 0)),   # action tile
            const(w1_s.shape),                         # weights stay VMEM-resident
            const(w1_a.shape),
            const(b1.shape),
            const(w2.shape),
            const(b2.shape),
            const(w3.shape),
            const(b3.shape),
        ],
        out_specs=pl.BlockSpec((TB, 1), lambda i: (i, 0)),
        compiler_params=pltpu.CompilerParams(
            dimension_semantics=("parallel",)),
    )(s, a, w1_s, w1_a, b1, w2, b2, w3, b3)

    return out[:B]


def init_params(key, state_dim, action_dim):
    """Deterministic PyTorch-style Linear init (uniform(-1/sqrt(fan_in), +))."""
    d_in = state_dim + action_dim
    keys = jax.random.split(key, 6)

    def linear(kw, kb, fan_in, fan_out):
        bound = 1.0 / jnp.sqrt(jnp.float32(fan_in))
        w = jax.random.uniform(kw, (fan_in, fan_out), jnp.float32, -bound, bound)
        b = jax.random.uniform(kb, (1, fan_out), jnp.float32, -bound, bound)
        return w, b

    w1, b1 = linear(keys[0], keys[1], d_in, HIDDEN)
    w2, b2 = linear(keys[2], keys[3], HIDDEN, HIDDEN)
    w3, b3 = linear(keys[4], keys[5], HIDDEN, 1)

    # Kernel layout: W1 split by input (fused concat), bf16 weights for the MXU,
    # f32 biases, W3 as a (1, 256) f32 row for the VPU epilogue.
    w1_s = w1[:state_dim].astype(jnp.bfloat16)
    w1_a = w1[state_dim:].astype(jnp.bfloat16)
    w2_bf = w2.astype(jnp.bfloat16)
    w3_row = w3.T  # (1, 256) f32
    return (w1_s, w1_a, b1, w2_bf, b2, w3_row, b3)


def reference_forward(state, action, params):
    """Pure-JAX reference emulating the kernel's numerics (bf16 in, f32 acc)."""
    w1_s, w1_a, b1, w2, b2, w3, b3 = params
    f32 = jnp.float32
    s = state.astype(jnp.bfloat16).astype(f32)
    a = action.astype(jnp.bfloat16).astype(f32)
    h1 = s @ w1_s.astype(f32) + a @ w1_a.astype(f32) + b1
    h1 = jnp.maximum(h1, 0.0)
    h2 = h1.astype(jnp.bfloat16).astype(f32) @ w2.astype(f32) + b2
    h2 = jnp.maximum(h2, 0.0)
    return jnp.sum(h2 * w3, axis=-1, keepdims=True) + b3


if __name__ == "__main__":
    key = jax.random.PRNGKey(0)
    k_params, k_state, k_action = jax.random.split(key, 3)

    B, STATE_DIM, ACTION_DIM = 8, 16, 8
    state = jax.random.normal(k_state, (B, STATE_DIM), jnp.float32)
    action = jax.random.normal(k_action, (B, ACTION_DIM), jnp.float32)
    params = init_params(k_params, STATE_DIM, ACTION_DIM)

    q1 = jax.block_until_ready(critic_forward(state, action, params))
    q_ref = reference_forward(state, action, params)

    assert q1.shape == (B, 1), q1.shape
    assert jnp.allclose(q1, q_ref, atol=1e-3, rtol=1e-3), (q1, q_ref)
    print("KERNEL_OK")
</pallas_src>

<mosaic_0001>
module attributes {stable_mosaic.version = 11 : i64} {
  func.func @critic_kernel(%arg0: i32, %arg1: memref<128x16xbf16, #tpu.memory_space<vmem>>, %arg2: memref<128x8xbf16, #tpu.memory_space<vmem>>, %arg3: memref<16x256xbf16, #tpu.memory_space<vmem>>, %arg4: memref<8x256xbf16, #tpu.memory_space<vmem>>, %arg5: memref<1x256xf32, #tpu.memory_space<vmem>>, %arg6: memref<256x256xbf16, #tpu.memory_space<vmem>>, %arg7: memref<1x256xf32, #tpu.memory_space<vmem>>, %arg8: memref<1x256xf32, #tpu.memory_space<vmem>>, %arg9: memref<1x1xf32, #tpu.memory_space<vmem>>, %arg10: memref<128x1xf32, #tpu.memory_space<vmem>>) attributes {dimension_semantics = [#tpu.dimension_semantics<parallel>], iteration_bounds = array<i64: 1>, scalar_prefetch = 0 : i64, scratch_operands = 0 : i64, tpu.core_type = #tpu.core_type<tc>, window_params = [{transform_indices = @transform_0, window_bounds = array<i64: 128, 16>}, {transform_indices = @transform_1, window_bounds = array<i64: 128, 8>}, {pipeline_mode = #tpu.pipeline_mode<synchronous>, transform_indices = @transform_2, window_bounds = array<i64: 16, 256>}, {pipeline_mode = #tpu.pipeline_mode<synchronous>, transform_indices = @transform_3, window_bounds = array<i64: 8, 256>}, {pipeline_mode = #tpu.pipeline_mode<synchronous>, transform_indices = @transform_4, window_bounds = array<i64: 1, 256>}, {pipeline_mode = #tpu.pipeline_mode<synchronous>, transform_indices = @transform_5, window_bounds = array<i64: 256, 256>}, {pipeline_mode = #tpu.pipeline_mode<synchronous>, transform_indices = @transform_6, window_bounds = array<i64: 1, 256>}, {pipeline_mode = #tpu.pipeline_mode<synchronous>, transform_indices = @transform_7, window_bounds = array<i64: 1, 256>}, {pipeline_mode = #tpu.pipeline_mode<synchronous>, transform_indices = @transform_8, window_bounds = array<i64: 1, 1>}, {transform_indices = @transform_9, window_bounds = array<i64: 128, 1>}]} {
    %c0 = arith.constant 0 : index
    %c0_0 = arith.constant 0 : index
    %0 = vector.load %arg1[%c0, %c0_0] : memref<128x16xbf16, #tpu.memory_space<vmem>>, vector<128x16xbf16>
    %c0_1 = arith.constant 0 : index
    %c0_2 = arith.constant 0 : index
    %1 = vector.load %arg3[%c0_1, %c0_2] : memref<16x256xbf16, #tpu.memory_space<vmem>>, vector<16x256xbf16>
    %cst = arith.constant dense<0.000000e+00> : vector<128x256xf32>
    %2 = tpu.matmul %0, %1, %cst {dimension_numbers = #tpu.dot_dimension_numbers<[1], [0], [0], [1], [0, 0, 1, 1], [], []>} : vector<128x16xbf16>, vector<16x256xbf16>, vector<128x256xf32> -> vector<128x256xf32>
    %c0_3 = arith.constant 0 : index
    %c0_4 = arith.constant 0 : index
    %3 = vector.load %arg2[%c0_3, %c0_4] : memref<128x8xbf16, #tpu.memory_space<vmem>>, vector<128x8xbf16>
    %c0_5 = arith.constant 0 : index
    %c0_6 = arith.constant 0 : index
    %4 = vector.load %arg4[%c0_5, %c0_6] : memref<8x256xbf16, #tpu.memory_space<vmem>>, vector<8x256xbf16>
    %cst_7 = arith.constant dense<0.000000e+00> : vector<128x256xf32>
    %5 = tpu.matmul %3, %4, %cst_7 {dimension_numbers = #tpu.dot_dimension_numbers<[1], [0], [0], [1], [0, 0, 1, 1], [], []>} : vector<128x8xbf16>, vector<8x256xbf16>, vector<128x256xf32> -> vector<128x256xf32>
    %6 = arith.addf %2, %5 : vector<128x256xf32>
    %c0_8 = arith.constant 0 : index
    %c0_9 = arith.constant 0 : index
    %7 = vector.load %arg5[%c0_8, %c0_9] : memref<1x256xf32, #tpu.memory_space<vmem>>, vector<1x256xf32>
    %8 = vector.broadcast %7 : vector<1x256xf32> to vector<128x256xf32>
    %9 = arith.addf %6, %8 : vector<128x256xf32>
    %cst_10 = arith.constant 0.000000e+00 : f32
    %10 = vector.broadcast %cst_10 : f32 to vector<128x256xf32>
    %11 = arith.maximumf %9, %10 : vector<128x256xf32>
    %12 = arith.truncf %11 : vector<128x256xf32> to vector<128x256xbf16>
    %c0_11 = arith.constant 0 : index
    %c0_12 = arith.constant 0 : index
    %13 = vector.load %arg6[%c0_11, %c0_12] : memref<256x256xbf16, #tpu.memory_space<vmem>>, vector<256x256xbf16>
    %cst_13 = arith.constant dense<0.000000e+00> : vector<128x256xf32>
    %14 = tpu.matmul %12, %13, %cst_13 {dimension_numbers = #tpu.dot_dimension_numbers<[1], [0], [0], [1], [0, 0, 1, 1], [], []>} : vector<128x256xbf16>, vector<256x256xbf16>, vector<128x256xf32> -> vector<128x256xf32>
    %c0_14 = arith.constant 0 : index
    %c0_15 = arith.constant 0 : index
    %15 = vector.load %arg7[%c0_14, %c0_15] : memref<1x256xf32, #tpu.memory_space<vmem>>, vector<1x256xf32>
    %16 = vector.broadcast %15 : vector<1x256xf32> to vector<128x256xf32>
    %17 = arith.addf %14, %16 : vector<128x256xf32>
    %cst_16 = arith.constant 0.000000e+00 : f32
    %18 = vector.broadcast %cst_16 : f32 to vector<128x256xf32>
    %19 = arith.maximumf %17, %18 : vector<128x256xf32>
    %c0_17 = arith.constant 0 : index
    %c0_18 = arith.constant 0 : index
    %20 = vector.load %arg8[%c0_17, %c0_18] : memref<1x256xf32, #tpu.memory_space<vmem>>, vector<1x256xf32>
    %21 = vector.broadcast %20 : vector<1x256xf32> to vector<128x256xf32>
    %22 = arith.mulf %19, %21 : vector<128x256xf32>
    %cst_19 = arith.constant dense<0.000000e+00> : vector<128xf32>
    %23 = vector.multi_reduction <add>, %22, %cst_19 [1] : vector<128x256xf32> to vector<128xf32>
    %24 = vector.shape_cast %23 : vector<128xf32> to vector<128x1xf32>
    %c0_20 = arith.constant 0 : index
    %c0_21 = arith.constant 0 : index
    %25 = vector.load %arg9[%c0_20, %c0_21] : memref<1x1xf32, #tpu.memory_space<vmem>>, vector<1x1xf32>
    %26 = vector.broadcast %25 : vector<1x1xf32> to vector<128x1xf32>
    %27 = arith.addf %24, %26 : vector<128x1xf32>
    %c0_22 = arith.constant 0 : index
    %c0_23 = arith.constant 0 : index
    %28 = vector.load %arg10[%c0_22, %c0_23] : memref<128x1xf32, #tpu.memory_space<vmem>>, vector<128x1xf32>
    tpu.vector_store %arg10[%c0_22, %c0_23], %27 {strides = array<i32>} : memref<128x1xf32, #tpu.memory_space<vmem>>, vector<128x1xf32>,
    return
  }
  func.func @transform_0(%arg0: i32) -> (i32, i32) {
    %c0_i32 = arith.constant 0 : i32
    %c0_i32_0 = arith.constant 0 : i32
    return %arg0, %c0_i32 : i32, i32
  }
  func.func @transform_1(%arg0: i32) -> (i32, i32) {
    %c0_i32 = arith.constant 0 : i32
    %c0_i32_0 = arith.constant 0 : i32
    return %arg0, %c0_i32 : i32, i32
  }
  func.func @transform_2(%arg0: i32) -> (i32, i32) {
    %c0_i32 = arith.constant 0 : i32
    %c0_i32_0 = arith.constant 0 : i32
    %c0_i32_1 = arith.constant 0 : i32
    return %c0_i32, %c0_i32_0 : i32, i32
  }
  func.func @transform_3(%arg0: i32) -> (i32, i32) {
    %c0_i32 = arith.constant 0 : i32
    %c0_i32_0 = arith.constant 0 : i32
    %c0_i32_1 = arith.constant 0 : i32
    return %c0_i32, %c0_i32_0 : i32, i32
  }
  func.func @transform_4(%arg0: i32) -> (i32, i32) {
    %c0_i32 = arith.constant 0 : i32
    %c0_i32_0 = arith.constant 0 : i32
    %c0_i32_1 = arith.constant 0 : i32
    return %c0_i32, %c0_i32_0 : i32, i32
  }
  func.func @transform_5(%arg0: i32) -> (i32, i32) {
    %c0_i32 = arith.constant 0 : i32
    %c0_i32_0 = arith.constant 0 : i32
    %c0_i32_1 = arith.constant 0 : i32
    return %c0_i32, %c0_i32_0 : i32, i32
  }
  func.func @transform_6(%arg0: i32) -> (i32, i32) {
    %c0_i32 = arith.constant 0 : i32
    %c0_i32_0 = arith.constant 0 : i32
    %c0_i32_1 = arith.constant 0 : i32
    return %c0_i32, %c0_i32_0 : i32, i32
  }
  func.func @transform_7(%arg0: i32) -> (i32, i32) {
    %c0_i32 = arith.constant 0 : i32
    %c0_i32_0 = arith.constant 0 : i32
    %c0_i32_1 = arith.constant 0 : i32
    return %c0_i32, %c0_i32_0 : i32, i32
  }
  func.func @transform_8(%arg0: i32) -> (i32, i32) {
    %c0_i32 = arith.constant 0 : i32
    %c0_i32_0 = arith.constant 0 : i32
    %c0_i32_1 = arith.constant 0 : i32
    return %c0_i32, %c0_i32_0 : i32, i32
  }
  func.func @transform_9(%arg0: i32) -> (i32, i32) {
    %c0_i32 = arith.constant 0 : i32
    %c0_i32_0 = arith.constant 0 : i32
    return %arg0, %c0_i32 : i32, i32
  }
}

</mosaic_0001>

<bundles_post_ra>
// kernel: tpu_custom_call.1
= control target key start
LH: loop header
LB: loop body
LE: loop exit
PB: predicated region body
PF: predicated region fallthrough
CT: control target
= control target key end

     0   :  { %s1588_s0 = inlined_call_operand.vmem [shape: bf16[128,16], index: 0, kind: input, shape index: {}]   ;;  %s1589_s1 = inlined_call_operand.vmem [shape: bf16[128,8], index: 1, kind: input, shape index: {}]   ;;  %s1590_s2 = inlined_call_operand.vmem [shape: bf16[16,256], index: 2, kind: input, shape index: {}]   ;;  %s1591_s3 = inlined_call_operand.vmem [shape: bf16[8,256], index: 3, kind: input, shape index: {}]   ;;  %s1592_s4 = inlined_call_operand.vmem [shape: f32[1,256], index: 4, kind: input, shape index: {}]   ;;  %s1593_s5 = inlined_call_operand.hbm [shape: bf16[256,256], index: 5, kind: input, shape index: {}]   ;;  %s1594_s6 = inlined_call_operand.vmem [shape: f32[1,256], index: 6, kind: input, shape index: {}]   ;;  %s1595_s7 = inlined_call_operand.vmem [shape: f32[1,256], index: 7, kind: input, shape index: {}]   ;;  %s1596_s8 = inlined_call_operand.<no memory space> [shape: f32[1,1], index: 8, kind: input, shape index: {}]   ;;  %s1597_s9 = inlined_call_operand.vmem [shape: f32[128,1], index: 9, kind: output, shape index: {}]  }
   0x1   :  { %v14_v0 = vstv %s1596_s8 }
   0x2   :  { %15 = vst [vmem:[#allocation2] sm:$0x1] %v14_v0 }
   0x3   :  { %16 = vsyncpa [#allocation4], 0  ;;  %s1239_s11 = smov [#allocation3]   ;;  %s1215_s15 = scalar_lea.hbm %s1593_s5, 4096 }
   0x4   :  { %s32_s12 = sshll.u32 %s1239_s11, 4  ;;  %p1216_p0 = scmp.ne.s32.totalorder %s1593_s5, %s1215_s15  ;;  %s33_s12 = int_to_ptr.vmem [resolvable:$true] %s32_s12 }
   0x5   :  { %p1219_p1 = scmp.lt.u32.totalorder %s1215_s15, %s1593_s5 }
   0x7   :  { %p1221_p2 = pnand %p1219_p1, %p1216_p0 }
   0x9   :  { %1224 = shalt.err (!%p1221_p2)
}
   0xa   :  { %s1225_s8 = scalar_lea.vmem %s33_s12, 4096  ;;  %p1230_p4 = scmp.lt.s32.totalorder %s33_s12, %s33_s12 }
   0xb   :  { %p1226_p3 = scmp.ne.s32.totalorder %s33_s12, %s1225_s8  ;;  %p1231_p5 = scmp.lt.s32.totalorder %s1225_s8, %s1225_s8 }
   0xd   :  { %p1232_p6 = por %p1231_p5, %p1230_p4 }
   0xf   :  { %p1233_p7 = pnand %p1232_p6, %p1226_p3 }
  0x11   :  { %1236 = shalt.err (!%p1233_p7)
}
  0x12   :  { %s1240_s20 = smov 128   ;;  %s1241_s21 = smov 8  }
  0x13   :  { %38 = dma.hbm_to_vmem [thread:$0]  %s1593_s5, 4096, %s33_s12, [#allocation4], %s1240_s20, %s1240_s20, %s1241_s21  }
  0x14   :  { %1237 = dma.done.wait [#allocation4], 4096  }
  0x15   :  { %1238 = vsyncadd [#allocation4], 4294963200  ;;  %v1242_v1 = vmov 0   ;;  %v83_v2 = vld [vmem:[%s1591_s3] sm:$0xff]  ;;  %vm154_vm0 = vcmask 1043456   ;;  %vm129_vm1 = vcmask 64512   ;;  %v464_v56 = vlaneseq }
  0x16   :  { %193 = vmatprep.mubr.bf16.mxu0 %v1242_v1  ;;  %v1049_v3 = vcombine.high %v83_v2, %v83_v2  ;;  %v1048_v4 = vcombine.low %v83_v2, %v83_v2  ;;  %v1151_v5 = vld [vmem:[%s1590_s2 + $0x4] ss:$8 sps:$4 sm:$0xff]   ;;  %v1149_v8 = vld [vmem:[%s1590_s2] ss:$8 sps:$4 sm:$0xff]   ;;  %v1153_v10 = vld [vmem:[%s1589_s1 + $0x10] sm:$0xff]   ;;  %vm324_vm2 = vcmask 130048  }
  0x17   :  { %v1148_v7 = vld [vmem:[%s1589_s1] sm:$0xff]   ;;  %v1152_v9 = vld [vmem:[%s1589_s1 + $0x8] sm:$0xff]   ;;  %v1172_v14 = vld [vmem:[#allocation3 + $0x10] ss:$8 sps:$4 sm:$0xff]   ;;  %v465_v57 = vshrl.u32 %v464_v56, 7  ;;  %vm1018_vm3 = vcmask 7168  }
  0x18   :  { %1050 = vmatprep.subr.msk.bf16.mxu0 %vm154_vm0, %v1049_v3  ;;  %v156_v6 = vsel %vm154_vm0, %v1048_v4, 0  ;;  %v1167_v11 = vld [vmem:[#allocation3 + $0x4] ss:$8 sps:$4 sm:$0xff]   ;;  %v1169_v12 = vld [vmem:[#allocation3] ss:$8 sps:$4 sm:$0xff]   ;;  %v1154_v18 = vld [vmem:[%s1589_s1 + $0x18] sm:$0xff]  }
  0x19   :  { %162 = vmatpush1.bf16.msra.mxu0 %v156_v6  ;;  %v1170_v13 = vld [vmem:[#allocation3 + $0x14] ss:$8 sps:$4 sm:$0xff]   ;;  %758 = vmatprep.subr.bf16.mxu1 %v1167_v11  ;;  %v1173_v15 = vld [vmem:[#allocation3 + $0x24] ss:$8 sps:$4 sm:$0xff]   ;;  %v1175_v16 = vld [vmem:[#allocation3 + $0x20] ss:$8 sps:$4 sm:$0xff]  }
  0x1a   :  { %349 = vmatprep.subr.bf16.mxu0 %v1151_v5  ;;  %759 = vmatpush1.bf16.msra.mxu1 %v1169_v12  ;;  %v1176_v17 = vld [vmem:[#allocation3 + $0x34] ss:$8 sps:$4 sm:$0xff]   ;;  %v1178_v19 = vld [vmem:[#allocation3 + $0x30] ss:$8 sps:$4 sm:$0xff]   ;;  %v1179_v20 = vld [vmem:[#allocation3 + $0x44] ss:$8 sps:$4 sm:$0xff]  }
  0x1b   :  { %760 = vmatprep.subr.bf16.mxu1 %v1170_v13  ;;  %v1181_v21 = vld [vmem:[#allocation3 + $0x40] ss:$8 sps:$4 sm:$0xff]   ;;  %v1182_v22 = vld [vmem:[#allocation3 + $0x54] ss:$8 sps:$4 sm:$0xff]   ;;  %v1184_v24 = vld [vmem:[#allocation3 + $0x50] ss:$8 sps:$4 sm:$0xff]  }
  0x1c   :  { %1051 = vmatmul.mubr.msk.bf16.vlgmr.msra.gmra.mrb[0].mxu0 %vm129_vm1, %v1148_v7  ;;  %v1155_v23 = vld [vmem:[%s1589_s1 + $0x20] sm:$0xff]   ;;  %v1156_v28 = vld [vmem:[%s1589_s1 + $0x28] sm:$0xff]   ;;  %v1190_v29 = vld [vmem:[#allocation3 + $0x70] ss:$8 sps:$4 sm:$0xff]   ;;  %v1397_v58 = vsub.s32 0, %v465_v57  ;;  %v1402_v60 = vsub.s32 1, %v465_v57 }
  0x1d   :  { %350 = vmatpush1.bf16.msra.mxu0 %v1149_v8  ;;  %203 = vmatprep.mubr.bf16.mxu0 %v1242_v1  ;;  %v1185_v25 = vld [vmem:[#allocation3 + $0x64] ss:$8 sps:$4 sm:$0xff]   ;;  %v1187_v26 = vld [vmem:[#allocation3 + $0x60] ss:$8 sps:$4 sm:$0xff]   ;;  %v1188_v27 = vld [vmem:[#allocation3 + $0x74] ss:$8 sps:$4 sm:$0xff]  }
  0x1e   :  { %761 = vmatpush1.bf16.msra.mxu1 %v1172_v14  ;;  %v1191_v30 = vld [vmem:[#allocation3 + $0x84] ss:$8 sps:$4 sm:$0xff]   ;;  %v1193_v31 = vld [vmem:[#allocation3 + $0x80] ss:$8 sps:$4 sm:$0xff]   ;;  %v1194_v32 = vld [vmem:[#allocation3 + $0x94] ss:$8 sps:$4 sm:$0xff]  }
  0x1f   :  { %762 = vmatprep.subr.bf16.mxu1 %v1173_v15  ;;  %v1157_v33 = vld [vmem:[%s1589_s1 + $0x30] sm:$0xff]   ;;  %v1199_v36 = vld [vmem:[#allocation3 + $0xa0] ss:$8 sps:$4 sm:$0xff]   ;;  %v1158_v38 = vld [vmem:[%s1589_s1 + $0x38] sm:$0xff]  }
  0x20   :  { %v1196_v34 = vld [vmem:[#allocation3 + $0x90] ss:$8 sps:$4 sm:$0xff]   ;;  %v1197_v35 = vld [vmem:[#allocation3 + $0xa4] ss:$8 sps:$4 sm:$0xff]   ;;  %v1200_v37 = vld [vmem:[#allocation3 + $0xb4] ss:$8 sps:$4 sm:$0xff]  }
  0x21   :  { %v1202_v39 = vld [vmem:[#allocation3 + $0xb0] ss:$8 sps:$4 sm:$0xff]   ;;  %v1203_v40 = vld [vmem:[#allocation3 + $0xc4] ss:$8 sps:$4 sm:$0xff]   ;;  %v1205_v41 = vld [vmem:[#allocation3 + $0xc0] ss:$8 sps:$4 sm:$0xff]  }
  0x22   :  { %763 = vmatpush1.bf16.msra.mxu1 %v1175_v16  ;;  %v1206_v42 = vld [vmem:[#allocation3 + $0xd4] ss:$8 sps:$4 sm:$0xff]   ;;  %v1160_v44 = vld [vmem:[%s1588_s0 + $0x8] sm:$0xff]   ;;  %v1208_v51 = vld [vmem:[#allocation3 + $0xd0] ss:$8 sps:$4 sm:$0xff]  }
  0x23   :  { %764 = vmatprep.subr.bf16.mxu1 %v1176_v17  ;;  %v1159_v43 = vld [vmem:[%s1588_s0] sm:$0xff]   ;;  %v1161_v45 = vld [vmem:[%s1588_s0 + $0x10] sm:$0xff]   ;;  %v1162_v46 = vld [vmem:[%s1588_s0 + $0x18] sm:$0xff]  }
  0x24   :  { %1052 = vmatmul.mubr.msk.bf16.gmra.mrb[4].mxu0 %vm129_vm1, %v1152_v9  ;;  %v1163_v47 = vld [vmem:[%s1588_s0 + $0x20] sm:$0xff]   ;;  %v1164_v48 = vld [vmem:[%s1588_s0 + $0x28] sm:$0xff]   ;;  %v1165_v49 = vld [vmem:[%s1588_s0 + $0x30] sm:$0xff]  }
  0x25   :  { %213 = vmatprep.mubr.bf16.mxu0 %v1242_v1  ;;  %v1166_v50 = vld [vmem:[%s1588_s0 + $0x38] sm:$0xff]   ;;  %v1209_v52 = vld [vmem:[#allocation3 + $0xe4] ss:$8 sps:$4 sm:$0xff]   ;;  %v1211_v53 = vld [vmem:[#allocation3 + $0xe0] ss:$8 sps:$4 sm:$0xff]  }
  0x26   :  { %765 = vmatpush1.bf16.msra.mxu1 %v1178_v19  ;;  %v1212_v54 = vld [vmem:[#allocation3 + $0xf4] ss:$8 sps:$4 sm:$0xff]   ;;  %v1214_v55 = vld [vmem:[#allocation3 + $0xf0] ss:$8 sps:$4 sm:$0xff]  }
  0x27   :  { %766 = vmatprep.subr.bf16.mxu1 %v1179_v20  ;;  %v462_v59 = vld [vmem:[%s1592_s4] sm:$0x3] }
  0x28   :  { %v1405_v61 = vrot.slane %v462_v59, %v1397_v58  ;;  %v1408_v62 = vrot.slane %v462_v59, %v1402_v60 }
  0x2a   :  { %767 = vmatpush1.bf16.msra.mxu1 %v1181_v21 }
  0x2b   :  { %768 = vmatprep.subr.bf16.mxu1 %v1182_v22 }
  0x2c   :  { %1053 = vmatmul.mubr.msk.bf16.gmra.mrb[8].mxu0 %vm129_vm1, %v1153_v10 }
  0x2d   :  { %223 = vmatprep.mubr.bf16.mxu0 %v1242_v1 }
  0x2e   :  { %769 = vmatpush1.bf16.msra.mxu1 %v1184_v24 }
  0x2f   :  { %770 = vmatprep.subr.bf16.mxu1 %v1185_v25 }
  0x32   :  { %771 = vmatpush1.bf16.msra.mxu1 %v1187_v26 }
  0x33   :  { %772 = vmatprep.subr.bf16.mxu1 %v1188_v27 }
  0x34   :  { %1054 = vmatmul.mubr.msk.bf16.gmra.mrb[12].mxu0 %vm129_vm1, %v1154_v18 }
  0x35   :  { %233 = vmatprep.mubr.bf16.mxu0 %v1242_v1 }
  0x36   :  { %773 = vmatpush1.bf16.msra.mxu1 %v1190_v29 }
  0x37   :  { %774 = vmatprep.subr.bf16.mxu1 %v1191_v30 }
  0x3a   :  { %775 = vmatpush1.bf16.msra.mxu1 %v1193_v31 }
  0x3b   :  { %776 = vmatprep.subr.bf16.mxu1 %v1194_v32 }
  0x3c   :  { %1055 = vmatmul.mubr.msk.bf16.gmra.mrb[16].mxu0 %vm129_vm1, %v1155_v23 }
  0x3d   :  { %243 = vmatprep.mubr.bf16.mxu0 %v1242_v1 }
  0x3e   :  { %777 = vmatpush1.bf16.msra.mxu1 %v1196_v34 }
  0x3f   :  { %778 = vmatprep.subr.bf16.mxu1 %v1197_v35 }
  0x42   :  { %779 = vmatpush1.bf16.msra.mxu1 %v1199_v36 }
  0x43   :  { %780 = vmatprep.subr.bf16.mxu1 %v1200_v37 }
  0x44   :  { %1056 = vmatmul.mubr.msk.bf16.gmra.mrb[20].mxu0 %vm129_vm1, %v1156_v28 }
  0x45   :  { %253 = vmatprep.mubr.bf16.mxu0 %v1242_v1 }
  0x46   :  { %781 = vmatpush1.bf16.msra.mxu1 %v1202_v39 }
  0x47   :  { %782 = vmatprep.subr.bf16.mxu1 %v1203_v40 }
  0x4a   :  { %783 = vmatpush1.bf16.msra.mxu1 %v1205_v41 }
  0x4b   :  { %784 = vmatprep.subr.bf16.mxu1 %v1206_v42 }
  0x4c   :  { %1057 = vmatmul.mubr.msk.bf16.gmra.mrb[24].mxu0 %vm129_vm1, %v1157_v33 }
  0x4d   :  { %263 = vmatprep.mubr.bf16.mxu0 %v1242_v1 }
  0x4e   :  { %785 = vmatpush1.bf16.msra.mxu1 %v1208_v51 }
  0x4f   :  { %786 = vmatprep.subr.bf16.mxu1 %v1209_v52 }
  0x52   :  { %787 = vmatpush1.bf16.msra.mxu1 %v1211_v53 }
  0x53   :  { %788 = vmatprep.subr.bf16.mxu1 %v1212_v54 }
  0x54   :  { %1058 = vmatmul.mubr.msk.bf16.gmra.mrb[28].mxu0 %vm129_vm1, %v1158_v38 }
  0x55   :  { %381 = vmatprep.mubr.bf16.mxu0 %v1242_v1 }
  0x56   :  { %789 = vmatpush1.bf16.msra.mxu1 %v1214_v55 }
  0x5c   :  { %1069 = vmatmul.mubr.msk.bf16.vlgmr.msra.gmra.mrb[0].mxu0 %vm324_vm2, %v1159_v43 }
  0x5d   :  { %391 = vmatprep.mubr.bf16.mxu0 %v1242_v1 }
  0x64   :  { %1070 = vmatmul.mubr.msk.bf16.gmra.mrb[4].mxu0 %vm324_vm2, %v1160_v44 }
  0x65   :  { %401 = vmatprep.mubr.bf16.mxu0 %v1242_v1 }
  0x6c   :  { %1071 = vmatmul.mubr.msk.bf16.gmra.mrb[8].mxu0 %vm324_vm2, %v1161_v45 }
  0x6d   :  { %411 = vmatprep.mubr.bf16.mxu0 %v1242_v1 }
  0x74   :  { %1072 = vmatmul.mubr.msk.bf16.gmra.mrb[12].mxu0 %vm324_vm2, %v1162_v46 }
  0x75   :  { %421 = vmatprep.mubr.bf16.mxu0 %v1242_v1 }
  0x7c   :  { %1073 = vmatmul.mubr.msk.bf16.gmra.mrb[16].mxu0 %vm324_vm2, %v1163_v47 }
  0x7d   :  { %431 = vmatprep.mubr.bf16.mxu0 %v1242_v1 }
  0x84   :  { %1074 = vmatmul.mubr.msk.bf16.gmra.mrb[20].mxu0 %vm324_vm2, %v1164_v48 }
  0x85   :  { %441 = vmatprep.mubr.bf16.mxu0 %v1242_v1 }
  0x8c   :  { %1075 = vmatmul.mubr.msk.bf16.gmra.mrb[24].mxu0 %vm324_vm2, %v1165_v49 }
  0x8d   :  { %451 = vmatprep.mubr.bf16.mxu0 %v1242_v1 }
  0x94   :  { %1076 = vmatmul.mubr.msk.bf16.gmra.mrb[28].mxu0 %vm324_vm2, %v1166_v50 }
 0x12f   :  { %v383_v63 = vpop.f32.mrb[0].mxu0 }
 0x130   :  { %v474_v0 = vadd.f32 %v1405_v61, %v383_v63  ;;  %v385_v1 = vpop.f32.mrb[1].mxu0 }
 0x131   :  { %v475_v2 = vadd.f32 %v1408_v62, %v385_v1  ;;  %v387_v3 = vpop.f32.mrb[2].mxu0 }
 0x132   :  { %v476_v4 = vadd.f32 %v1405_v61, %v387_v3  ;;  %v389_v5 = vpop.f32.mrb[3].mxu0  ;;  %v506_v7 = vmax.f32 %v474_v0, 0.0 }
 0x133   :  { %v477_v6 = vadd.f32 %v1408_v62, %v389_v5  ;;  %v507_v9 = vmax.f32 %v475_v2, 0.0 }
 0x134   :  { %v508_v8 = vmax.f32 %v476_v4, 0.0 }
 0x135   :  { %v509_v10 = vmax.f32 %v477_v6, 0.0 }
 0x136   :  { %v538_v11 = vpack.c.bf16 %v508_v8, %v506_v7 }
 0x137   :  { %v393_v12 = vpop.f32.mrb[4].mxu0  ;;  %v539_v13 = vpack.c.bf16 %v509_v10, %v507_v9 }
 0x138   :  { %v478_v14 = vadd.f32 %v1405_v61, %v393_v12  ;;  %v395_v15 = vpop.f32.mrb[5].mxu0 }
 0x139   :  { %v479_v16 = vadd.f32 %v1408_v62, %v395_v15  ;;  %v397_v17 = vpop.f32.mrb[6].mxu0  ;;  %790 = vmatprep.mubr.bf16.mxu1 %v539_v13 }
 0x13a   :  { %v480_v18 = vadd.f32 %v1405_v61, %v397_v17  ;;  %v399_v19 = vpop.f32.mrb[7].mxu0  ;;  %791 = vmatmul.mubr.bf16.vlgmr.msra.gmra.mrb[0].mxu1 %v538_v11  ;;  %v510_v21 = vmax.f32 %v478_v14, 0.0 }
 0x13b   :  { %v481_v20 = vadd.f32 %v1408_v62, %v399_v19  ;;  %v511_v23 = vmax.f32 %v479_v16, 0.0 }
 0x13c   :  { %v512_v22 = vmax.f32 %v480_v18, 0.0 }
 0x13d   :  { %v513_v24 = vmax.f32 %v481_v20, 0.0 }
 0x13e   :  { %v540_v25 = vpack.c.bf16 %v512_v22, %v510_v21 }
 0x13f   :  { %v541_v26 = vpack.c.bf16 %v513_v24, %v511_v23  ;;  %v403_v27 = vpop.f32.mrb[8].mxu0 }
 0x140   :  { %v482_v28 = vadd.f32 %v1405_v61, %v403_v27  ;;  %v405_v29 = vpop.f32.mrb[9].mxu0 }
 0x141   :  { %v483_v30 = vadd.f32 %v1408_v62, %v405_v29  ;;  %v407_v31 = vpop.f32.mrb[10].mxu0  ;;  %800 = vmatprep.mubr.bf16.mxu1 %v541_v26 }
 0x142   :  { %v484_v32 = vadd.f32 %v1405_v61, %v407_v31  ;;  %v409_v33 = vpop.f32.mrb[11].mxu0  ;;  %801 = vmatmul.mubr.bf16.gmra.mrb[4].mxu1 %v540_v25  ;;  %v514_v35 = vmax.f32 %v482_v28, 0.0 }
 0x143   :  { %v485_v34 = vadd.f32 %v1408_v62, %v409_v33  ;;  %v515_v37 = vmax.f32 %v483_v30, 0.0 }
 0x144   :  { %v516_v36 = vmax.f32 %v484_v32, 0.0 }
 0x145   :  { %v517_v38 = vmax.f32 %v485_v34, 0.0 }
 0x146   :  { %v542_v39 = vpack.c.bf16 %v516_v36, %v514_v35 }
 0x147   :  { %v543_v40 = vpack.c.bf16 %v517_v38, %v515_v37  ;;  %v413_v41 = vpop.f32.mrb[12].mxu0 }
 0x148   :  { %v486_v42 = vadd.f32 %v1405_v61, %v413_v41  ;;  %v415_v43 = vpop.f32.mrb[13].mxu0 }
 0x149   :  { %v487_v44 = vadd.f32 %v1408_v62, %v415_v43  ;;  %v417_v45 = vpop.f32.mrb[14].mxu0  ;;  %810 = vmatprep.mubr.bf16.mxu1 %v543_v40 }
 0x14a   :  { %v488_v46 = vadd.f32 %v1405_v61, %v417_v45  ;;  %v419_v47 = vpop.f32.mrb[15].mxu0  ;;  %811 = vmatmul.mubr.bf16.gmra.mrb[8].mxu1 %v542_v39  ;;  %v518_v49 = vmax.f32 %v486_v42, 0.0 }
 0x14b   :  { %v489_v48 = vadd.f32 %v1408_v62, %v419_v47  ;;  %v519_v51 = vmax.f32 %v487_v44, 0.0 }
 0x14c   :  { %v520_v50 = vmax.f32 %v488_v46, 0.0 }
 0x14d   :  { %v521_v52 = vmax.f32 %v489_v48, 0.0 }
 0x14e   :  { %v544_v53 = vpack.c.bf16 %v520_v50, %v518_v49 }
 0x14f   :  { %v545_v54 = vpack.c.bf16 %v521_v52, %v519_v51  ;;  %v423_v55 = vpop.f32.mrb[16].mxu0  ;;  %v586_v51 = vld [vmem:[%s1594_s6] sm:$0x3] }
 0x150   :  { %v490_v56 = vadd.f32 %v1405_v61, %v423_v55  ;;  %v425_v57 = vpop.f32.mrb[17].mxu0  ;;  %v1446_v52 = vrot.slane %v586_v51, %v1397_v58 }
 0x151   :  { %v491_v59 = vadd.f32 %v1408_v62, %v425_v57  ;;  %v427_v63 = vpop.f32.mrb[18].mxu0  ;;  %820 = vmatprep.mubr.bf16.mxu1 %v545_v54 }
 0x152   :  { %v492_v0 = vadd.f32 %v1405_v61, %v427_v63  ;;  %v429_v1 = vpop.f32.mrb[19].mxu0  ;;  %821 = vmatmul.mubr.bf16.gmra.mrb[12].mxu1 %v544_v53  ;;  %v522_v3 = vmax.f32 %v490_v56, 0.0 }
 0x153   :  { %v493_v2 = vadd.f32 %v1408_v62, %v429_v1  ;;  %v523_v5 = vmax.f32 %v491_v59, 0.0 }
 0x154   :  { %v524_v4 = vmax.f32 %v492_v0, 0.0 }
 0x155   :  { %v525_v6 = vmax.f32 %v493_v2, 0.0 }
 0x156   :  { %v546_v7 = vpack.c.bf16 %v524_v4, %v522_v3 }
 0x157   :  { %v547_v8 = vpack.c.bf16 %v525_v6, %v523_v5  ;;  %v433_v9 = vpop.f32.mrb[20].mxu0 }
 0x158   :  { %v494_v10 = vadd.f32 %v1405_v61, %v433_v9  ;;  %v435_v11 = vpop.f32.mrb[21].mxu0 }
 0x159   :  { %v495_v12 = vadd.f32 %v1408_v62, %v435_v11  ;;  %v437_v13 = vpop.f32.mrb[22].mxu0  ;;  %830 = vmatprep.mubr.bf16.mxu1 %v547_v8 }
 0x15a   :  { %v496_v14 = vadd.f32 %v1405_v61, %v437_v13  ;;  %v439_v15 = vpop.f32.mrb[23].mxu0  ;;  %831 = vmatmul.mubr.bf16.gmra.mrb[16].mxu1 %v546_v7  ;;  %v526_v17 = vmax.f32 %v494_v10, 0.0 }
 0x15b   :  { %v497_v16 = vadd.f32 %v1408_v62, %v439_v15  ;;  %v527_v19 = vmax.f32 %v495_v12, 0.0 }
 0x15c   :  { %v528_v18 = vmax.f32 %v496_v14, 0.0 }
 0x15d   :  { %v529_v20 = vmax.f32 %v497_v16, 0.0 }
 0x15e   :  { %v548_v21 = vpack.c.bf16 %v528_v18, %v526_v17 }
 0x15f   :  { %v549_v22 = vpack.c.bf16 %v529_v20, %v527_v19  ;;  %v443_v23 = vpop.f32.mrb[24].mxu0 }
 0x160   :  { %v498_v24 = vadd.f32 %v1405_v61, %v443_v23  ;;  %v445_v25 = vpop.f32.mrb[25].mxu0 }
 0x161   :  { %v499_v26 = vadd.f32 %v1408_v62, %v445_v25  ;;  %v447_v27 = vpop.f32.mrb[26].mxu0  ;;  %840 = vmatprep.mubr.bf16.mxu1 %v549_v22 }
 0x162   :  { %v500_v28 = vadd.f32 %v1405_v61, %v447_v27  ;;  %v449_v29 = vpop.f32.mrb[27].mxu0  ;;  %841 = vmatmul.mubr.bf16.gmra.mrb[20].mxu1 %v548_v21  ;;  %v530_v31 = vmax.f32 %v498_v24, 0.0 }
 0x163   :  { %v501_v30 = vadd.f32 %v1408_v62, %v449_v29  ;;  %v531_v33 = vmax.f32 %v499_v26, 0.0 }
 0x164   :  { %v532_v32 = vmax.f32 %v500_v28, 0.0 }
 0x165   :  { %v533_v34 = vmax.f32 %v501_v30, 0.0 }
 0x166   :  { %v550_v35 = vpack.c.bf16 %v532_v32, %v530_v31 }
 0x167   :  { %v551_v36 = vpack.c.bf16 %v533_v34, %v531_v33  ;;  %v453_v37 = vpop.f32.mrb[28].mxu0 }
 0x168   :  { %v502_v38 = vadd.f32 %v1405_v61, %v453_v37  ;;  %v455_v39 = vpop.f32.mrb[29].mxu0 }
 0x169   :  { %v503_v40 = vadd.f32 %v1408_v62, %v455_v39  ;;  %v457_v41 = vpop.f32.mrb[30].mxu0  ;;  %850 = vmatprep.mubr.bf16.mxu1 %v551_v36 }
 0x16a   :  { %v504_v42 = vadd.f32 %v1405_v61, %v457_v41  ;;  %v459_v43 = vpop.f32.mrb[31].mxu0  ;;  %851 = vmatmul.mubr.bf16.gmra.mrb[24].mxu1 %v550_v35  ;;  %v534_v45 = vmax.f32 %v502_v38, 0.0  ;;  %v1449_v61 = vrot.slane %v586_v51, %v1402_v60 }
 0x16b   :  { %v505_v44 = vadd.f32 %v1408_v62, %v459_v43  ;;  %v535_v47 = vmax.f32 %v503_v40, 0.0  ;;  %v903_v62 = vld [vmem:[%s1595_s7] sm:$0x3] }
 0x16c   :  { %v536_v46 = vmax.f32 %v504_v42, 0.0  ;;  %v1456_v56 = vrot.slane %v903_v62, %v1397_v58  ;;  %v1460_v63 = vrot.slane %v903_v62, %v1402_v60 }
 0x16d   :  { %v537_v48 = vmax.f32 %v505_v44, 0.0 }
 0x16e   :  { %v552_v49 = vpack.c.bf16 %v536_v46, %v534_v45 }
 0x16f   :  { %v553_v50 = vpack.c.bf16 %v537_v48, %v535_v47 }
 0x171   :  { %860 = vmatprep.mubr.bf16.mxu1 %v553_v50 }
 0x172   :  { %861 = vmatmul.mubr.bf16.gmra.mrb[28].mxu1 %v552_v49 }
 0x20d   :  { %v792_v53 = vpop.f32.mrb[0].mxu1 }
 0x20e   :  { %v793_v54 = vadd.f32 %v792_v53, %v1446_v52  ;;  %v794_v55 = vpop.f32.mrb[1].mxu1 }
 0x20f   :  { %v795_v57 = vadd.f32 %v794_v55, %v1449_v61  ;;  %v796_v59 = vpop.f32.mrb[2].mxu1 }
 0x210   :  { %v871_v0 = vmax.f32 %v793_v54, 0.0  ;;  %v797_v1 = vadd.f32 %v796_v59, %v1446_v52  ;;  %v798_v2 = vpop.f32.mrb[3].mxu1 }
 0x211   :  { %v872_v3 = vmax.f32 %v795_v57, 0.0  ;;  %v799_v4 = vadd.f32 %v798_v2, %v1449_v61 }
 0x212   :  { %v873_v5 = vmax.f32 %v797_v1, 0.0  ;;  %v915_v6 = vmul.f32 %v1456_v56, %v871_v0 }
 0x213   :  { %v874_v7 = vmax.f32 %v799_v4, 0.0  ;;  %v916_v58 = vmul.f32 %v1460_v63, %v872_v3 }
 0x214   :  { %v917_v8 = vmul.f32 %v1456_v56, %v873_v5 }
 0x215   :  { %v918_v9 = vmul.f32 %v1460_v63, %v874_v7  ;;  %v802_v10 = vpop.f32.mrb[4].mxu1  ;;  %v947_v60 = vadd.f32 %v916_v58, %v915_v6 }
 0x216   :  { %v803_v11 = vadd.f32 %v802_v10, %v1446_v52  ;;  %v804_v12 = vpop.f32.mrb[5].mxu1 }
 0x217   :  { %v805_v13 = vadd.f32 %v804_v12, %v1449_v61  ;;  %948 = vadd.xlane.f32.xlu0 %v947_v60  ;;  %v806_v14 = vpop.f32.mrb[6].mxu1  ;;  %v950_v15 = vadd.f32 %v918_v9, %v917_v8 }
 0x218   :  { %v875_v16 = vmax.f32 %v803_v11, 0.0  ;;  %v807_v17 = vadd.f32 %v806_v14, %v1446_v52  ;;  %v808_v18 = vpop.f32.mrb[7].mxu1 }
 0x219   :  { %v876_v19 = vmax.f32 %v805_v13, 0.0  ;;  %v809_v20 = vadd.f32 %v808_v18, %v1449_v61 }
 0x21a   :  { %v877_v21 = vmax.f32 %v807_v17, 0.0  ;;  %v919_v22 = vmul.f32 %v1456_v56, %v875_v16 }
 0x21b   :  { %v878_v23 = vmax.f32 %v809_v20, 0.0  ;;  %951 = vadd.xlane.f32.xlu0 %v950_v15  ;;  %v920_v24 = vmul.f32 %v1460_v63, %v876_v19 }
 0x21c   :  { %v921_v25 = vmul.f32 %v1456_v56, %v877_v21 }
 0x21d   :  { %v922_v26 = vmul.f32 %v1460_v63, %v878_v23  ;;  %v812_v27 = vpop.f32.mrb[8].mxu1  ;;  %v953_v28 = vadd.f32 %v920_v24, %v919_v22 }
 0x21e   :  { %v813_v29 = vadd.f32 %v812_v27, %v1446_v52  ;;  %v814_v30 = vpop.f32.mrb[9].mxu1 }
 0x21f   :  { %v815_v31 = vadd.f32 %v814_v30, %v1449_v61  ;;  %954 = vadd.xlane.f32.xlu1 %v953_v28  ;;  %v816_v32 = vpop.f32.mrb[10].mxu1  ;;  %v956_v33 = vadd.f32 %v922_v26, %v921_v25 }
 0x220   :  { %v879_v34 = vmax.f32 %v813_v29, 0.0  ;;  %v817_v35 = vadd.f32 %v816_v32, %v1446_v52  ;;  %v818_v36 = vpop.f32.mrb[11].mxu1 }
 0x221   :  { %v880_v37 = vmax.f32 %v815_v31, 0.0  ;;  %v819_v38 = vadd.f32 %v818_v36, %v1449_v61 }
 0x222   :  { %v923_v39 = vmul.f32 %v1456_v56, %v879_v34  ;;  %v881_v40 = vmax.f32 %v817_v35, 0.0 }
 0x223   :  { %v924_v41 = vmul.f32 %v1460_v63, %v880_v37  ;;  %v882_v42 = vmax.f32 %v819_v38, 0.0  ;;  %957 = vadd.xlane.f32.xlu1 %v956_v33 }
 0x224   :  { %v925_v43 = vmul.f32 %v1456_v56, %v881_v40 }
 0x225   :  { %v926_v44 = vmul.f32 %v1460_v63, %v882_v42  ;;  %v822_v45 = vpop.f32.mrb[12].mxu1  ;;  %v959_v46 = vadd.f32 %v924_v41, %v923_v39 }
 0x226   :  { %v823_v47 = vadd.f32 %v822_v45, %v1446_v52  ;;  %v824_v48 = vpop.f32.mrb[13].mxu1 }
 0x227   :  { %v825_v49 = vadd.f32 %v824_v48, %v1449_v61  ;;  %960 = vadd.xlane.f32.xlu0 %v959_v46  ;;  %v826_v50 = vpop.f32.mrb[14].mxu1  ;;  %v962_v51 = vadd.f32 %v926_v44, %v925_v43 }
 0x228   :  { %v883_v62 = vmax.f32 %v823_v47, 0.0  ;;  %v827_v53 = vadd.f32 %v826_v50, %v1446_v52  ;;  %v828_v54 = vpop.f32.mrb[15].mxu1 }
 0x229   :  { %v884_v55 = vmax.f32 %v825_v49, 0.0  ;;  %v829_v57 = vadd.f32 %v828_v54, %v1449_v61  ;;  %963 = vadd.xlane.f32.xlu1 %v962_v51 }
 0x22a   :  { %v927_v59 = vmul.f32 %v1456_v56, %v883_v62  ;;  %v885_v0 = vmax.f32 %v827_v53, 0.0 }
 0x22b   :  { %v928_v1 = vmul.f32 %v1460_v63, %v884_v55  ;;  %v886_v2 = vmax.f32 %v829_v57, 0.0 }
 0x22c   :  { %v929_v3 = vmul.f32 %v1456_v56, %v885_v0 }
 0x22d   :  { %v930_v4 = vmul.f32 %v1460_v63, %v886_v2  ;;  %v832_v5 = vpop.f32.mrb[16].mxu1  ;;  %v965_v6 = vadd.f32 %v928_v1, %v927_v59 }
 0x22e   :  { %v833_v7 = vadd.f32 %v832_v5, %v1446_v52  ;;  %v834_v58 = vpop.f32.mrb[17].mxu1 }
 0x22f   :  { %v835_v8 = vadd.f32 %v834_v58, %v1449_v61  ;;  %966 = vadd.xlane.f32.xlu0 %v965_v6  ;;  %v836_v9 = vpop.f32.mrb[18].mxu1  ;;  %v968_v10 = vadd.f32 %v930_v4, %v929_v3 }
 0x230   :  { %v887_v60 = vmax.f32 %v833_v7, 0.0  ;;  %v837_v11 = vadd.f32 %v836_v9, %v1446_v52  ;;  %v838_v12 = vpop.f32.mrb[19].mxu1 }
 0x231   :  { %v888_v13 = vmax.f32 %v835_v8, 0.0  ;;  %v839_v14 = vadd.f32 %v838_v12, %v1449_v61  ;;  %969 = vadd.xlane.f32.xlu1 %v968_v10 }
 0x232   :  { %v931_v15 = vmul.f32 %v1456_v56, %v887_v60  ;;  %v889_v16 = vmax.f32 %v837_v11, 0.0 }
 0x233   :  { %v932_v17 = vmul.f32 %v1460_v63, %v888_v13  ;;  %v890_v18 = vmax.f32 %v839_v14, 0.0 }
 0x234   :  { %v933_v19 = vmul.f32 %v1456_v56, %v889_v16 }
 0x235   :  { %v934_v20 = vmul.f32 %v1460_v63, %v890_v18  ;;  %v842_v21 = vpop.f32.mrb[20].mxu1  ;;  %v971_v22 = vadd.f32 %v932_v17, %v931_v15 }
 0x236   :  { %v843_v23 = vadd.f32 %v842_v21, %v1446_v52  ;;  %v844_v24 = vpop.f32.mrb[21].mxu1 }
 0x237   :  { %v845_v25 = vadd.f32 %v844_v24, %v1449_v61  ;;  %972 = vadd.xlane.f32.xlu0 %v971_v22  ;;  %v846_v26 = vpop.f32.mrb[22].mxu1  ;;  %v974_v27 = vadd.f32 %v934_v20, %v933_v19 }
 0x238   :  { %v891_v28 = vmax.f32 %v843_v23, 0.0  ;;  %v847_v29 = vadd.f32 %v846_v26, %v1446_v52  ;;  %v848_v30 = vpop.f32.mrb[23].mxu1 }
 0x239   :  { %v892_v31 = vmax.f32 %v845_v25, 0.0  ;;  %v849_v32 = vadd.f32 %v848_v30, %v1449_v61  ;;  %975 = vadd.xlane.f32.xlu1 %v974_v27 }
 0x23a   :  { %v935_v33 = vmul.f32 %v1456_v56, %v891_v28  ;;  %v893_v34 = vmax.f32 %v847_v29, 0.0 }
 0x23b   :  { %v936_v35 = vmul.f32 %v1460_v63, %v892_v31  ;;  %v894_v36 = vmax.f32 %v849_v32, 0.0 }
 0x23c   :  { %v937_v37 = vmul.f32 %v1456_v56, %v893_v34 }
 0x23d   :  { %v938_v38 = vmul.f32 %v1460_v63, %v894_v36  ;;  %v852_v39 = vpop.f32.mrb[24].mxu1  ;;  %v977_v40 = vadd.f32 %v936_v35, %v935_v33 }
 0x23e   :  { %v853_v41 = vadd.f32 %v852_v39, %v1446_v52  ;;  %v854_v42 = vpop.f32.mrb[25].mxu1 }
 0x23f   :  { %v855_v43 = vadd.f32 %v854_v42, %v1449_v61  ;;  %978 = vadd.xlane.f32.xlu0 %v977_v40  ;;  %v856_v44 = vpop.f32.mrb[26].mxu1  ;;  %v980_v45 = vadd.f32 %v938_v38, %v937_v37 }
 0x240   :  { %v895_v46 = vmax.f32 %v853_v41, 0.0  ;;  %v857_v47 = vadd.f32 %v856_v44, %v1446_v52  ;;  %v858_v48 = vpop.f32.mrb[27].mxu1 }
 0x241   :  { %v896_v49 = vmax.f32 %v855_v43, 0.0  ;;  %v859_v50 = vadd.f32 %v858_v48, %v1449_v61  ;;  %981 = vadd.xlane.f32.xlu1 %v980_v45 }
 0x242   :  { %v939_v51 = vmul.f32 %v1456_v56, %v895_v46  ;;  %v897_v62 = vmax.f32 %v857_v47, 0.0 }
 0x243   :  { %v940_v53 = vmul.f32 %v1460_v63, %v896_v49  ;;  %v898_v54 = vmax.f32 %v859_v50, 0.0 }
 0x244   :  { %v941_v55 = vmul.f32 %v1456_v56, %v897_v62 }
 0x245   :  { %v942_v57 = vmul.f32 %v1460_v63, %v898_v54  ;;  %v862_v59 = vpop.f32.mrb[28].mxu1  ;;  %v983_v0 = vadd.f32 %v940_v53, %v939_v51 }
 0x246   :  { %v863_v1 = vadd.f32 %v862_v59, %v1446_v52  ;;  %v864_v2 = vpop.f32.mrb[29].mxu1 }
 0x247   :  { %v865_v3 = vadd.f32 %v864_v2, %v1449_v61  ;;  %984 = vadd.xlane.f32.xlu0 %v983_v0  ;;  %v866_v4 = vpop.f32.mrb[30].mxu1  ;;  %v986_v5 = vadd.f32 %v942_v57, %v941_v55 }
 0x248   :  { %v899_v6 = vmax.f32 %v863_v1, 0.0  ;;  %v867_v7 = vadd.f32 %v866_v4, %v1446_v52  ;;  %v868_v58 = vpop.f32.mrb[31].mxu1  ;;  %v1109_v52 = vld [vmem:[#allocation2] ss:$0 sm:$0xff] }
 0x249   :  { %v900_v8 = vmax.f32 %v865_v3, 0.0  ;;  %v869_v9 = vadd.f32 %v868_v58, %v1449_v61  ;;  %987 = vadd.xlane.f32.xlu1 %v986_v5 }
 0x24a   :  { %v943_v10 = vmul.f32 %v1456_v56, %v899_v6  ;;  %v901_v60 = vmax.f32 %v867_v7, 0.0 }
 0x24b   :  { %v944_v11 = vmul.f32 %v1460_v63, %v900_v8  ;;  %v902_v12 = vmax.f32 %v869_v9, 0.0 }
 0x24c   :  { %v945_v13 = vmul.f32 %v1456_v56, %v901_v60 }
 0x24d   :  { %v946_v14 = vmul.f32 %v1460_v63, %v902_v12  ;;  %v989_v15 = vadd.f32 %v944_v11, %v943_v10 }
 0x24f   :  { %990 = vadd.xlane.f32.xlu0 %v989_v15  ;;  %v992_v16 = vadd.f32 %v946_v14, %v945_v13 }
 0x251   :  { %993 = vadd.xlane.f32.xlu1 %v992_v16 }
 0x2a4   :  { %v949_v17 = vpop.xlane.xlu0 %948 }
 0x2a5   :  { %v1002_v18 = vadd.f32 %v1109_v52, %v949_v17 }
 0x2a7   :  { %1019 = vst.msk [vmem:[%s1597_s9] sm:$0xff] %vm1018_vm3, %v1002_v18 }
 0x2a8   :  { %v952_v61 = vpop.xlane.xlu0 %951 }
 0x2a9   :  { %v1003_v19 = vadd.f32 %v1109_v52, %v952_v61 }
 0x2ab   :  { %1020 = vst.msk [vmem:[%s1597_s9 + $0x8] sm:$0xff] %vm1018_vm3, %v1003_v19 }
 0x2ac   :  { %v955_v56 = vpop.xlane.xlu1 %954 }
 0x2ad   :  { %v1004_v63 = vadd.f32 %v1109_v52, %v955_v56 }
 0x2af   :  { %1021 = vst.msk [vmem:[%s1597_s9 + $0x10] sm:$0xff] %vm1018_vm3, %v1004_v63 }
 0x2b0   :  { %v958_v20 = vpop.xlane.xlu1 %957 }
 0x2b1   :  { %v1005_v21 = vadd.f32 %v1109_v52, %v958_v20 }
 0x2b3   :  { %1022 = vst.msk [vmem:[%s1597_s9 + $0x18] sm:$0xff] %vm1018_vm3, %v1005_v21 }
 0x2b4   :  { %v961_v22 = vpop.xlane.xlu0 %960 }
 0x2b5   :  { %v1006_v23 = vadd.f32 %v1109_v52, %v961_v22 }
 0x2b6   :  { %v964_v24 = vpop.xlane.xlu1 %963 }
 0x2b7   :  { %1023 = vst.msk [vmem:[%s1597_s9 + $0x20] sm:$0xff] %vm1018_vm3, %v1006_v23  ;;  %v1007_v25 = vadd.f32 %v1109_v52, %v964_v24 }
 0x2b9   :  { %1024 = vst.msk [vmem:[%s1597_s9 + $0x28] sm:$0xff] %vm1018_vm3, %v1007_v25 }
 0x2bc   :  { %v967_v26 = vpop.xlane.xlu0 %966 }
 0x2bd   :  { %v1008_v27 = vadd.f32 %v1109_v52, %v967_v26 }
 0x2be   :  { %v970_v28 = vpop.xlane.xlu1 %969 }
 0x2bf   :  { %1025 = vst.msk [vmem:[%s1597_s9 + $0x30] sm:$0xff] %vm1018_vm3, %v1008_v27  ;;  %v1009_v29 = vadd.f32 %v1109_v52, %v970_v28 }
 0x2c1   :  { %1026 = vst.msk [vmem:[%s1597_s9 + $0x38] sm:$0xff] %vm1018_vm3, %v1009_v29 }
 0x2c4   :  { %v973_v30 = vpop.xlane.xlu0 %972 }
 0x2c5   :  { %v1010_v31 = vadd.f32 %v1109_v52, %v973_v30 }
 0x2c6   :  { %v976_v32 = vpop.xlane.xlu1 %975 }
 0x2c7   :  { %1027 = vst.msk [vmem:[%s1597_s9 + $0x40] sm:$0xff] %vm1018_vm3, %v1010_v31  ;;  %v1011_v33 = vadd.f32 %v1109_v52, %v976_v32 }
 0x2c9   :  { %1028 = vst.msk [vmem:[%s1597_s9 + $0x48] sm:$0xff] %vm1018_vm3, %v1011_v33 }
 0x2cc   :  { %v979_v34 = vpop.xlane.xlu0 %978 }
 0x2cd   :  { %v1012_v35 = vadd.f32 %v1109_v52, %v979_v34 }
 0x2ce   :  { %v982_v36 = vpop.xlane.xlu1 %981 }
 0x2cf   :  { %1029 = vst.msk [vmem:[%s1597_s9 + $0x50] sm:$0xff] %vm1018_vm3, %v1012_v35  ;;  %v1013_v37 = vadd.f32 %v1109_v52, %v982_v36 }
 0x2d1   :  { %1030 = vst.msk [vmem:[%s1597_s9 + $0x58] sm:$0xff] %vm1018_vm3, %v1013_v37 }
 0x2d4   :  { %v985_v38 = vpop.xlane.xlu0 %984 }
 0x2d5   :  { %v1014_v39 = vadd.f32 %v1109_v52, %v985_v38 }
 0x2d6   :  { %v988_v40 = vpop.xlane.xlu1 %987 }
 0x2d7   :  { %1031 = vst.msk [vmem:[%s1597_s9 + $0x60] sm:$0xff] %vm1018_vm3, %v1014_v39  ;;  %v1015_v41 = vadd.f32 %v1109_v52, %v988_v40 }
 0x2d9   :  { %1032 = vst.msk [vmem:[%s1597_s9 + $0x68] sm:$0xff] %vm1018_vm3, %v1015_v41 }
 0x2dc   :  { %v991_v42 = vpop.xlane.xlu0 %990 }
 0x2dd   :  { %v1016_v43 = vadd.f32 %v1109_v52, %v991_v42 }
 0x2de   :  { %v994_v44 = vpop.xlane.xlu1 %993 }
 0x2df   :  { %1033 = vst.msk [vmem:[%s1597_s9 + $0x70] sm:$0xff] %vm1018_vm3, %v1016_v43  ;;  %v1017_v45 = vadd.f32 %v1109_v52, %v994_v44 }
 0x2e1   :  { %1034 = vst.msk [vmem:[%s1597_s9 + $0x78] sm:$0xff] %vm1018_vm3, %v1017_v45 }
 0x2e2   :  { %1039 = vsyncpa [#allocation4], 1 }

</bundles_post_ra>
